<compile_context>
chip_gen: v7x
topology: tpu7x:2x2x1
jax: 0.10.0
libtpu: 0.0.40
codegen_flags: <defaults>
</compile_context>

<pallas_src>
import jax
import jax.numpy as jnp
from jax.experimental import pallas as pl
from jax.experimental.pallas import tpu as pltpu


def _round_up(x, m):
    return ((x + m - 1) // m) * m


def _pick_tile(dim, desired, align):
    """Largest `align`-aligned tile <= desired that minimizes padding of `dim`."""
    dim_al = _round_up(dim, align)
    desired = min(_round_up(desired, align), dim_al)
    lo = _round_up(max(align, min(desired, 128)), align)
    best_t = desired
    best_pad = _round_up(dim_al, best_t)
    t = lo
    while t <= desired:
        pad = _round_up(dim_al, t)
        if pad < best_pad or (pad == best_pad and t > best_t):
            best_t, best_pad = t, pad
        t += align
    return best_t


def linear_relu_kernel(x_ref, w_ref, b_ref, o_ref, acc_ref):
    # Grid = (M/tm, N/tn, K/tk); k (reduction) is the last, "arbitrary" axis.
    k = pl.program_id(2)
    nk = pl.num_programs(2)

    # Hot path: bf16 MXU matmul, f32 accumulation.
    partial = jnp.dot(x_ref[...], w_ref[...], preferred_element_type=jnp.float32)

    @pl.when(k == 0)
    def _():
        acc_ref[...] = partial          # no zero-fill + RMW on the first step

    @pl.when(k > 0)
    def _():
        acc_ref[...] += partial

    # Epilogue only once, on the final k step: bias add + ReLU + single store.
    @pl.when(k == nk - 1)
    def _():
        y = acc_ref[...] + b_ref[...]
        o_ref[...] = jnp.maximum(y, 0.0).astype(o_ref.dtype)


def linear_relu(x2d, weight, bias, *, out_features=None, tm=512, tn=512, tk=512):
    """y = relu(x2d @ weight + bias) via a tiled Pallas TPU kernel.

    x2d: [M, K] (any float dtype), weight: [Kw, Nw] (may be pre-padded,
    Kw >= K), bias: [Nw] or [1, Nw].  Returns [M, out_features or Nw] in
    x2d.dtype.  Operands are cast to bf16 for the MXU; accumulation is f32.
    """
    M, K = x2d.shape
    Kw, Nw = weight.shape
    assert Kw >= K
    if bias.ndim == 1:
        bias = bias.reshape(1, -1)
    assert bias.shape == (1, Nw)
    N = Nw if out_features is None else out_features
    out_dtype = x2d.dtype

    # Padding-friendly, lane/sublane-legal tiles (tm mult of 8, tn/tk of 128).
    tm = _pick_tile(M, tm, 8)
    tn = _pick_tile(Nw, tn, 128)
    tk = _pick_tile(Kw, tk, 128)

    Mp = _round_up(M, tm)
    Kp = _round_up(Kw, tk)
    Np = _round_up(Nw, tn)

    xp = x2d if (Mp, Kp) == (M, K) else jnp.pad(x2d, ((0, Mp - M), (0, Kp - K)))
    wp = weight if (Kp, Np) == (Kw, Nw) else jnp.pad(
        weight, ((0, Kp - Kw), (0, Np - Nw)))
    bp = bias if Np == Nw else jnp.pad(bias, ((0, 0), (0, Np - Nw)))

    # bf16 operands for full-rate MXU on v5e/v6e/v7x (no-ops if pre-cast).
    xp = xp.astype(jnp.bfloat16)
    wp = wp.astype(jnp.bfloat16)
    bp = bp.astype(jnp.float32)

    grid = (Mp // tm, Np // tn, Kp // tk)
    gm, gn, gk = grid
    out_itemsize = jnp.dtype(out_dtype).itemsize
    bytes_accessed = (Mp * Kp * 2 * gn      # x streamed once per j-block
                      + Kp * Np * 2 * gm    # W streamed once per i-block
                      + Np * 4 * gm         # bias
                      + Mp * Np * out_itemsize)

    out = pl.pallas_call(
        linear_relu_kernel,
        out_shape=jax.ShapeDtypeStruct((Mp, Np), out_dtype),
        grid_spec=pltpu.PrefetchScalarGridSpec(
            num_scalar_prefetch=0,
            grid=grid,
            in_specs=[
                pl.BlockSpec((tm, tk), lambda i, j, k: (i, k)),   # x tile
                pl.BlockSpec((tk, tn), lambda i, j, k: (k, j)),   # W tile
                pl.BlockSpec((1, tn), lambda i, j, k: (0, j)),    # bias tile
            ],
            out_specs=pl.BlockSpec((tm, tn), lambda i, j, k: (i, j)),
            scratch_shapes=[pltpu.VMEM((tm, tn), jnp.float32)],
        ),
        compiler_params=pltpu.CompilerParams(
            dimension_semantics=("parallel", "parallel", "arbitrary"),
            # 48 MiB leaves headroom under v7x's 64 MiB physical VMEM while
            # comfortably covering the double-buffered bf16 tiles + f32 acc.
            vmem_limit_bytes=48 * 1024 * 1024,
        ),
        cost_estimate=pl.CostEstimate(
            flops=2 * Mp * Np * Kp,
            bytes_accessed=bytes_accessed,
            transcendentals=0,
        ),
    )(xp, wp, bp)

    return out[:M, :N]


_linear_relu_jit = jax.jit(
    linear_relu, static_argnames=("out_features", "tm", "tn", "tk"))


class LinearReLU:
    """The wrapped module: y = relu(x @ W + b), computed in a Pallas kernel."""

    def __init__(self, d_in, d_out, key):
        k1, k2 = jax.random.split(key)
        self.weight = (jax.random.normal(k1, (d_in, d_out), jnp.float32)
                       / jnp.sqrt(jnp.float32(d_in)))
        self.bias = 0.01 * jax.random.normal(k2, (d_out,), jnp.float32)
        self.d_in = d_in
        self.d_out = d_out
        # Pre-pad to lane-aligned shapes and pre-cast the weight to bf16 ONCE,
        # so the per-forward path never re-copies the weight in HBM.
        kp = _round_up(d_in, 128)
        npad = _round_up(d_out, 128)
        self._w_dev = jnp.pad(
            self.weight, ((0, kp - d_in), (0, npad - d_out))).astype(jnp.bfloat16)
        self._b_dev = jnp.pad(
            self.bias, (0, npad - d_out)).reshape(1, npad).astype(jnp.float32)

    def __call__(self, x):
        B, S, D = x.shape
        assert D == self.d_in
        out = _linear_relu_jit(x.reshape(B * S, D), self._w_dev, self._b_dev,
                               out_features=self.d_out)
        return out.reshape(B, S, self.d_out)


class NoDataParallel:
    """Faithful port of the PyTorch wrapper: pure delegation (no compute)."""

    def __init__(self, module):
        self.module = module

    def __getattr__(self, name):
        # Only hit when normal lookup fails -> delegate to wrapped module.
        return getattr(self.__dict__["module"], name)

    def forward(self, *inputs, **kwargs):
        return self.module(*inputs, **kwargs)

    def __call__(self, *inputs, **kwargs):
        return self.forward(*inputs, **kwargs)


if __name__ == "__main__":
    key = jax.random.PRNGKey(0)
    k_param, k_x, k_big = jax.random.split(key, 3)

    # Small demo shape implied by the module usage.
    batch, seq, hidden = 2, 8, 32
    inner = LinearReLU(hidden, hidden, k_param)
    model = NoDataParallel(inner)

    x = jax.random.normal(k_x, (batch, seq, hidden), jnp.float32)
    y = jax.block_until_ready(model(x))  # forward delegates to the Pallas kernel

    y_ref = jnp.maximum(x.reshape(-1, hidden) @ inner.weight + inner.bias, 0.0)
    y_ref = y_ref.reshape(batch, seq, hidden)
    assert y.shape == (batch, seq, hidden)
    # bf16 operands -> looser tolerance vs. the f32 reference.
    assert jnp.allclose(y, y_ref, atol=3e-2, rtol=3e-2)

    # Multi-tile check: exercises the (i, j, k) grid, the K accumulation loop,
    # the pl.when init/finalize epilogue, and the padding-friendly tile pick
    # (384 now uses 384-tiles, no padding waste).
    M, K, N = 384, 1024, 384
    kx, kw, kb = jax.random.split(k_big, 3)
    xb = jax.random.normal(kx, (M, K), jnp.float32)
    wb = jax.random.normal(kw, (K, N), jnp.float32) / jnp.sqrt(jnp.float32(K))
    bb = 0.01 * jax.random.normal(kb, (N,), jnp.float32)
    yb = jax.block_until_ready(_linear_relu_jit(xb, wb, bb))
    yb_ref = jnp.maximum(xb @ wb + bb, 0.0)
    assert yb.shape == (M, N)
    assert jnp.allclose(yb, yb_ref, atol=5e-2, rtol=5e-2)

    # Attribute delegation check (mirrors __getattr__ in the PyTorch module).
    assert model.d_out == hidden

    print("KERNEL_OK")
</pallas_src>

<mosaic_0001>
module attributes {stable_mosaic.version = 11 : i64} {
  func.func @linear_relu_kernel(%arg0: i32, %arg1: i32, %arg2: i32, %arg3: memref<16x128xbf16, #tpu.memory_space<vmem>>, %arg4: memref<128x128xbf16, #tpu.memory_space<vmem>>, %arg5: memref<1x128xf32, #tpu.memory_space<vmem>>, %arg6: memref<16x128xf32, #tpu.memory_space<vmem>>, %arg7: memref<16x128xf32, #tpu.memory_space<vmem>>) attributes {dimension_semantics = [#tpu.dimension_semantics<parallel>, #tpu.dimension_semantics<parallel>, #tpu.dimension_semantics<arbitrary>], iteration_bounds = array<i64: 1, 1, 1>, scalar_prefetch = 0 : i64, scratch_operands = 1 : i64, tpu.core_type = #tpu.core_type<tc>, window_params = [{transform_indices = @transform_0, window_bounds = array<i64: 16, 128>}, {transform_indices = @transform_1, window_bounds = array<i64: 128, 128>}, {transform_indices = @transform_2, window_bounds = array<i64: 1, 128>}, {transform_indices = @transform_3, window_bounds = array<i64: 16, 128>}]} {
    %c0 = arith.constant 0 : index
    %c0_0 = arith.constant 0 : index
    %0 = vector.load %arg3[%c0, %c0_0] : memref<16x128xbf16, #tpu.memory_space<vmem>>, vector<16x128xbf16>
    %c0_1 = arith.constant 0 : index
    %c0_2 = arith.constant 0 : index
    %1 = vector.load %arg4[%c0_1, %c0_2] : memref<128x128xbf16, #tpu.memory_space<vmem>>, vector<128x128xbf16>
    %cst = arith.constant dense<0.000000e+00> : vector<16x128xf32>
    %2 = tpu.matmul %0, %1, %cst {dimension_numbers = #tpu.dot_dimension_numbers<[1], [0], [0], [1], [0, 0, 1, 1], [], []>} : vector<16x128xbf16>, vector<128x128xbf16>, vector<16x128xf32> -> vector<16x128xf32>
    %c0_i32 = arith.constant 0 : i32
    %3 = arith.cmpi eq, %arg2, %c0_i32 : i32
    %4 = arith.extui %3 : i1 to i32
    %c0_i32_3 = arith.constant 0 : i32
    %5 = arith.cmpi ne, %4, %c0_i32_3 : i32
    scf.if %5 {
      %c0_8 = arith.constant 0 : index
      %c0_9 = arith.constant 0 : index
      %12 = vector.load %arg7[%c0_8, %c0_9] : memref<16x128xf32, #tpu.memory_space<vmem>>, vector<16x128xf32>
      tpu.vector_store %arg7[%c0_8, %c0_9], %2 {strides = array<i32>} : memref<16x128xf32, #tpu.memory_space<vmem>>, vector<16x128xf32>,
    } else {
    }
    %c0_i32_4 = arith.constant 0 : i32
    %6 = arith.cmpi sgt, %arg2, %c0_i32_4 : i32
    %7 = arith.extui %6 : i1 to i32
    %c0_i32_5 = arith.constant 0 : i32
    %8 = arith.cmpi ne, %7, %c0_i32_5 : i32
    scf.if %8 {
      %c0_8 = arith.constant 0 : index
      %c0_9 = arith.constant 0 : index
      %12 = vector.load %arg7[%c0_8, %c0_9] : memref<16x128xf32, #tpu.memory_space<vmem>>, vector<16x128xf32>
      %13 = arith.addf %12, %2 : vector<16x128xf32>
      %c0_10 = arith.constant 0 : index
      %c0_11 = arith.constant 0 : index
      %14 = vector.load %arg7[%c0_10, %c0_11] : memref<16x128xf32, #tpu.memory_space<vmem>>, vector<16x128xf32>
      tpu.vector_store %arg7[%c0_10, %c0_11], %13 {strides = array<i32>} : memref<16x128xf32, #tpu.memory_space<vmem>>, vector<16x128xf32>,
    } else {
    }
    %c0_i32_6 = arith.constant 0 : i32
    %9 = arith.cmpi eq, %arg2, %c0_i32_6 : i32
    %10 = arith.extui %9 : i1 to i32
    %c0_i32_7 = arith.constant 0 : i32
    %11 = arith.cmpi ne, %10, %c0_i32_7 : i32
    scf.if %11 {
      %c0_8 = arith.constant 0 : index
      %c0_9 = arith.constant 0 : index
      %12 = vector.load %arg7[%c0_8, %c0_9] : memref<16x128xf32, #tpu.memory_space<vmem>>, vector<16x128xf32>
      %c0_10 = arith.constant 0 : index
      %c0_11 = arith.constant 0 : index
      %13 = vector.load %arg5[%c0_10, %c0_11] : memref<1x128xf32, #tpu.memory_space<vmem>>, vector<1x128xf32>
      %14 = vector.broadcast %13 : vector<1x128xf32> to vector<16x128xf32>
      %15 = arith.addf %12, %14 : vector<16x128xf32>
      %cst_12 = arith.constant 0.000000e+00 : f32
      %16 = vector.broadcast %cst_12 : f32 to vector<16x128xf32>
      %17 = arith.maximumf %15, %16 : vector<16x128xf32>
      %c0_13 = arith.constant 0 : index
      %c0_14 = arith.constant 0 : index
      %18 = vector.load %arg6[%c0_13, %c0_14] : memref<16x128xf32, #tpu.memory_space<vmem>>, vector<16x128xf32>
      tpu.vector_store %arg6[%c0_13, %c0_14], %17 {strides = array<i32>} : memref<16x128xf32, #tpu.memory_space<vmem>>, vector<16x128xf32>,
    } else {
    }
    return
  }
  func.func @transform_0(%arg0: i32, %arg1: i32, %arg2: i32) -> (i32, i32) {
    %c0_i32 = arith.constant 0 : i32
    return %arg0, %arg2 : i32, i32
  }
  func.func @transform_1(%arg0: i32, %arg1: i32, %arg2: i32) -> (i32, i32) {
    %c0_i32 = arith.constant 0 : i32
    return %arg2, %arg1 : i32, i32
  }
  func.func @transform_2(%arg0: i32, %arg1: i32, %arg2: i32) -> (i32, i32) {
    %c0_i32 = arith.constant 0 : i32
    %c0_i32_0 = arith.constant 0 : i32
    return %c0_i32, %arg1 : i32, i32
  }
  func.func @transform_3(%arg0: i32, %arg1: i32, %arg2: i32) -> (i32, i32) {
    %c0_i32 = arith.constant 0 : i32
    return %arg0, %arg1 : i32, i32
  }
}

</mosaic_0001>

<bundles_post_ra>
// kernel: linear_relu.1
= control target key start
LH: loop header
LB: loop body
LE: loop exit
PB: predicated region body
PF: predicated region fallthrough
CT: control target
= control target key end

     0   :  { %8 = vsyncpa [#allocation4], 0  ;;  %s356_s0 = inlined_call_operand.vmem [shape: bf16[16,128], index: 0, kind: input, shape index: {}]   ;;  %s357_s1 = inlined_call_operand.hbm [shape: bf16[128,128], index: 1, kind: input, shape index: {}]   ;;  %s358_s2 = inlined_call_operand.vmem [shape: f32[1,128], index: 2, kind: input, shape index: {}]   ;;  %s359_s3 = inlined_call_operand.hbm [shape: f32[16,128], index: 3, kind: output, shape index: {}]  }
   0x1   :  { %9 = vsyncpa [#allocation5], 0  ;;  %s298_s12 = smov [#allocation3]   ;;  %s250_s16 = scalar_lea.hbm %s357_s1, 1024 }
   0x2   :  { %s17_s13 = sshll.u32 %s298_s12, 4  ;;  %p251_p0 = scmp.ne.s32.totalorder %s357_s1, %s250_s16  ;;  %s18_s13 = int_to_ptr.vmem [resolvable:$true] %s17_s13 }
   0x3   :  { %p254_p1 = scmp.lt.u32.totalorder %s250_s16, %s357_s1 }
   0x5   :  { %p256_p2 = pnand %p254_p1, %p251_p0 }
   0x7   :  { %259 = shalt.err (!%p256_p2)
}
   0x8   :  { %s260_s21 = scalar_lea.vmem %s18_s13, 1024  ;;  %p265_p4 = scmp.lt.s32.totalorder %s18_s13, %s18_s13 }
   0x9   :  { %p261_p3 = scmp.ne.s32.totalorder %s18_s13, %s260_s21  ;;  %p266_p5 = scmp.lt.s32.totalorder %s260_s21, %s260_s21 }
   0xb   :  { %p267_p6 = por %p266_p5, %p265_p4 }
   0xd   :  { %p268_p7 = pnand %p267_p6, %p261_p3 }
   0xf   :  { %271 = shalt.err (!%p268_p7)
}
  0x10   :  { %s299_s22 = smov 64   ;;  %s300_s23 = smov 4  }
  0x11   :  { %23 = dma.hbm_to_vmem [thread:$0]  %s357_s1, 1024, %s18_s13, [#allocation4], %s299_s22, %s299_s22, %s300_s23  }
  0x12   :  { %294 = dma.done.wait [#allocation4], 1024  }
  0x13   :  { %295 = vsyncadd [#allocation4], 4294966272  ;;  %v301_v0 = vmov 0.0   ;;  %vm302_vm0 = vmmov 0   ;;  %v241_v1 = vld [vmem:[#allocation3] sm:$0xff]   ;;  %v242_v2 = vld [vmem:[#allocation3 + $0x8] sm:$0xff]  }
  0x14   :  { %213 = vmatprep.subr.bf16.mxu0 %v301_v0  ;;  %229 = vmatprep.mubr.msk.bf16.mxu0 %vm302_vm0, %v301_v0  ;;  %v243_v3 = vld [vmem:[#allocation3 + $0x10] sm:$0xff]   ;;  %v244_v4 = vld [vmem:[#allocation3 + $0x18] sm:$0xff]   ;;  %v245_v5 = vld [vmem:[#allocation3 + $0x20] sm:$0xff]   ;;  %s303_s29 = smov [#allocation6]  }
  0x15   :  { %214 = vmatpush3.bf16.msra.mxu0 %v241_v1  ;;  %v246_v6 = vld [vmem:[#allocation3 + $0x28] sm:$0xff]   ;;  %v247_v7 = vld [vmem:[#allocation3 + $0x30] sm:$0xff]   ;;  %v248_v8 = vld [vmem:[#allocation3 + $0x38] sm:$0xff]   ;;  %s182_s30 = sshll.u32 %s303_s29, 4  ;;  %s183_s30 = int_to_ptr.vmem [resolvable:$true] %s182_s30 }
  0x16   :  { %215 = vmatprep.subr.bf16.mxu0 %v301_v0  ;;  %v249_v9 = vld [vmem:[%s356_s0] sm:$0xff]   ;;  %s272_s0 = scalar_lea.vmem %s183_s30, 256  ;;  %p277_p9 = scmp.lt.s32.totalorder %s183_s30, %s183_s30 }
  0x17   :  { %v203_v10 = vld [vmem:[%s358_s2] ss:$0 sm:$0xff]  ;;  %p273_p8 = scmp.ne.s32.totalorder %s183_s30, %s272_s0  ;;  %p278_p10 = scmp.lt.s32.totalorder %s272_s0, %s272_s0 }
  0x19   :  { %216 = vmatpush3.bf16.msra.mxu0 %v242_v2  ;;  %p279_p11 = por %p278_p10, %p277_p9 }
  0x1a   :  { %217 = vmatprep.subr.bf16.mxu0 %v301_v0 }
  0x1b   :  { %p280_p12 = pnand %p279_p11, %p273_p8 }
  0x1d   :  { %218 = vmatpush3.bf16.msra.mxu0 %v243_v3 }
  0x1e   :  { %219 = vmatprep.subr.bf16.mxu0 %v301_v0 }
  0x21   :  { %220 = vmatpush3.bf16.msra.mxu0 %v244_v4 }
  0x22   :  { %221 = vmatprep.subr.bf16.mxu0 %v301_v0 }
  0x25   :  { %222 = vmatpush3.bf16.msra.mxu0 %v245_v5 }
  0x26   :  { %223 = vmatprep.subr.bf16.mxu0 %v301_v0 }
  0x29   :  { %224 = vmatpush3.bf16.msra.mxu0 %v246_v6 }
  0x2a   :  { %225 = vmatprep.subr.bf16.mxu0 %v301_v0 }
  0x2d   :  { %226 = vmatpush3.bf16.msra.mxu0 %v247_v7 }
  0x2e   :  { %227 = vmatprep.subr.bf16.mxu0 %v301_v0 }
  0x31   :  { %228 = vmatpush3.bf16.msra.mxu0 %v248_v8 }
  0x34   :  { %230 = vmatmul.mubr.bf16.vlgmr.msra.gmra.mrb[0].mxu0 %v249_v9 }
 0x107   :  { %v136_v11 = vpop.f32.mrb[0].mxu0 }
 0x108   :  { %v171_v12 = vadd.f32 %v203_v10, %v136_v11  ;;  %v231_v13 = vpop.f32.mrb[1].mxu0 }
 0x109   :  { %v139_v14 = vpop.f32.mrb[2].mxu0 }
 0x10a   :  { %v173_v15 = vmax.f32 %v171_v12, 0.0  ;;  %v172_v16 = vadd.f32 %v203_v10, %v139_v14  ;;  %v232_v17 = vpop.f32.mrb[3].mxu0 }
 0x10c   :  { %175 = vst [vmem:[#allocation6] sm:$0xff] %v173_v15  ;;  %v174_v18 = vmax.f32 %v172_v16, 0.0 }
 0x10e   :  { %176 = vst [vmem:[#allocation6 + $0x8] sm:$0xff] %v174_v18 }
 0x10f   :  { %283 = shalt.err (!%p280_p12)
}
 0x110   :  { %s284_s5 = scalar_lea.hbm %s359_s3, 256 }
 0x111   :  { %p285_p13 = scmp.ne.s32.totalorder %s359_s3, %s284_s5  ;;  %p288_p0 = scmp.lt.u32.totalorder %s284_s5, %s359_s3 }
 0x113   :  { %p290_p1 = pnand %p288_p0, %p285_p13 }
 0x115   :  { %293 = shalt.err (!%p290_p1)
}
 0x116   :  { %s304_s10 = smov 128   ;;  %s305_s11 = smov 8  }
 0x117   :  { %188 = dma.vmem_to_hbm [thread:$0]  %s183_s30, 256, %s359_s3, [#allocation5], %s304_s10, %s304_s10, %s305_s11  }
 0x118   :  { %296 = dma.done.wait [#allocation5], 256  }
 0x119   :  { %297 = vsyncadd [#allocation5], 4294967040 }
 0x11a   :  { %192 = vsyncpa [#allocation4], 1 }
 0x11b   :  { %193 = vsyncpa [#allocation5], 1 }

</bundles_post_ra>
